<compile_context>
chip_gen: v7x
topology: tpu7x:2x2x1
jax: 0.10.0
libtpu: 0.0.40
codegen_flags: <defaults>
</compile_context>

<pallas_src>
import jax
import jax.numpy as jnp
from jax import lax
from jax.experimental import pallas as pl
from jax.experimental.pallas import tpu as pltpu


def _round_up(x, m):
    return ((x + m - 1) // m) * m


def _cdiv(a, b):
    return -(-a // b)


def _vmem_capacity_bytes():
    try:
        cap = int(getattr(pltpu.get_tpu_info(), "vmem_capacity_bytes", 0))
        if cap > 0:
            return cap
    except Exception:
        pass
    return 64 * 1024 * 1024  # conservative per-core default (v7x-sized)


def _pick_tile_rows(kh, w_lanes, wo_lanes, itemsize, budget_bytes):
    """Largest row tile (multiple of 8, <=512) whose buffers fit the budget."""
    def bytes_needed(t):
        xrows = 2 * t + kh                              # strip + halo + worst-case overshoot
        return (2 * xrows * w_lanes * itemsize          # input double buffer
                + 2 * _round_up(t, 8) * wo_lanes * 4)   # output double buffer
    tm = 512
    while tm > 8 and bytes_needed(tm) > budget_bytes:
        tm //= 2
    return tm


def _make_kernel(*, hs, nc, spc, tm, kh, kw, w, ho, wo, overshoot, nbuf, rs, cs):
    strip_rows = tm + kh - 1

    def kernel(w_ref, b_ref, x_hbm, o_ref, xbuf, sem):
        c = pl.program_id(0)          # "parallel" axis: TensorCore chunk
        t = pl.program_id(1)          # "arbitrary" axis: strips within a core

        strip_raw = c * spc + t
        strip = jnp.minimum(strip_raw, hs - 1)
        slot = (t % 2) if nbuf == 2 else 0

        # SMEM scalar reads hoisted above the DMA wait (hidden under it).
        wvals = [[w_ref[i, j] for j in range(kw)] for i in range(kh)]
        bval = b_ref[0]

        def copy_for(strip_idx, slot_idx):
            in_row0 = jnp.minimum(strip_idx * tm, ho - tm)
            return pltpu.make_async_copy(
                x_hbm.at[pl.ds(in_row0, strip_rows), :],
                xbuf.at[slot_idx, pl.ds(0, strip_rows), :],
                sem.at[slot_idx],
            )

        @pl.when(t == 0)
        def _():
            if overshoot > 0:
                # Deterministic contents for the never-DMA'd overhang rows
                # (they only feed output rows clipped by the block writeback).
                xbuf[:, strip_rows:, :] = jnp.zeros(
                    (nbuf, overshoot, w), dtype=xbuf.dtype)
            copy_for(strip, slot).start()

        def compute_step():
            copy_for(strip, slot).wait()

            if spc > 1:
                # Prefetch the next strip owned by this core (overlaps with
                # this strip's compute).
                @pl.when((t + 1 < spc) & (strip_raw + 1 < hs))
                def _():
                    copy_for(strip_raw + 1, 1 - slot).start()

            in_row0 = jnp.minimum(strip * tm, ho - tm)
            roff = strip * tm - in_row0   # > 0 only on the clamped last strip
            xb = xbuf.at[slot]

            def do_row_block(out_r0, in_r0, nrows):
                # One register-resident (nrows, cw) accumulator per column
                # chunk; kh*kw taps unrolled; exactly one store to o_ref.
                for c0 in range(0, wo, cs):
                    cw = min(cs, wo - c0)
                    acc = jnp.zeros((nrows, cw), jnp.float32)
                    for i in range(kh):
                        for j in range(kw):
                            xt = xb[pl.ds(in_r0 + i, nrows), pl.ds(c0 + j, cw)]
                            acc = acc + xt.astype(jnp.float32) * wvals[i][j]
                    o_ref[pl.ds(out_r0, nrows), pl.ds(c0, cw)] = (
                        acc + bval).astype(o_ref.dtype)

            n_full = tm // rs
            r_rem = tm - n_full * rs
            if n_full == 1:
                do_row_block(0, roff, rs)
            elif n_full > 1:
                def row_body(rc, carry):
                    r0 = rc * rs
                    do_row_block(r0, roff + r0, rs)
                    return carry
                lax.fori_loop(0, n_full, row_body, 0)
            if r_rem > 0:
                r0 = n_full * rs
                do_row_block(r0, roff + r0, r_rem)

        if nc * spc == hs:
            compute_step()
        else:
            # Odd strip count: the last core has one duplicate step; its block
            # index repeats the previous step's, so skipping compute is safe.
            pl.when(strip_raw < hs)(compute_step)

    return kernel


def conv_layer_forward(x, weight, bias, *, tm=None, row_chunk=8, col_chunk=512):
    """Pallas equivalent of ConvLayer.forward: corr2d(X, weight) + bias."""
    h, w = x.shape
    kh, kw = weight.shape
    ho, wo = h - kh + 1, w - kw + 1
    assert ho >= 1 and wo >= 1, "kernel larger than input"

    weight = weight.astype(jnp.float32)
    bias = bias.astype(jnp.float32)

    # Generation-aware VMEM budget (per-core capacity).
    vmem_cap = _vmem_capacity_bytes()
    budget = int(vmem_cap * 0.30)
    vmem_limit = max(32 * 1024 * 1024,
                     min(int(vmem_cap * 0.5), 100 * 1024 * 1024))

    w_lanes = _round_up(w, 128)
    wo_lanes = _round_up(wo, 128)
    if tm is None:
        tm = _pick_tile_rows(kh, w_lanes, wo_lanes, x.dtype.itemsize, budget)

    # Row-strip geometry: single strip if it fits, otherwise rebalanced
    # multiple-of-8 strips so the last strip is not nearly empty.
    if ho <= tm:
        tm, hs = ho, 1
    else:
        hs = _cdiv(ho, tm)
        tm = _round_up(_cdiv(ho, hs), 8)
        hs = _cdiv(ho, tm)
    overshoot = hs * tm - ho              # < tm
    strip_rows = tm + kh - 1
    xrows = strip_rows + overshoot

    nc = min(2, hs)                       # megacore split of the strip axis
    spc = _cdiv(hs, nc)                   # strips per core
    nbuf = 2 if spc > 1 else 1

    kernel = _make_kernel(
        hs=hs, nc=nc, spc=spc, tm=tm, kh=kh, kw=kw, w=w, ho=ho, wo=wo,
        overshoot=overshoot, nbuf=nbuf, rs=row_chunk, cs=col_chunk)

    if nc * spc == hs:
        out_index_map = lambda c, t: (c * spc + t, 0)
    else:
        out_index_map = lambda c, t: (jnp.minimum(c * spc + t, hs - 1), 0)

    out = pl.pallas_call(
        kernel,
        out_shape=jax.ShapeDtypeStruct((ho, wo), jnp.float32),
        grid_spec=pltpu.PrefetchScalarGridSpec(
            num_scalar_prefetch=0,
            grid=(nc, spc),
            in_specs=[
                pl.BlockSpec(memory_space=pltpu.MemorySpace.SMEM),  # weight
                pl.BlockSpec(memory_space=pltpu.MemorySpace.SMEM),  # bias
                pl.BlockSpec(memory_space=pl.ANY),                  # x in HBM
            ],
            out_specs=pl.BlockSpec((tm, wo), out_index_map),
            scratch_shapes=[
                pltpu.VMEM((nbuf, xrows, w), x.dtype),
                pltpu.SemaphoreType.DMA((nbuf,)),
            ],
        ),
        compiler_params=pltpu.CompilerParams(
            dimension_semantics=("parallel", "arbitrary"),
            vmem_limit_bytes=vmem_limit,
        ),
        cost_estimate=pl.CostEstimate(
            flops=2 * kh * kw * ho * wo,
            transcendentals=0,
            bytes_accessed=(x.dtype.itemsize * h * w + 4 * ho * wo
                            + 4 * (kh * kw + 1)),
        ),
    )(weight, bias, x)
    return out


def corr2d_ref_loop(x, k):
    """Pure-JAX reference mirroring the PyTorch corr2d double loop."""
    kh, kw = k.shape
    ho, wo = x.shape[0] - kh + 1, x.shape[1] - kw + 1
    out = jnp.zeros((ho, wo), jnp.float32)
    for i in range(ho):
        for j in range(wo):
            out = out.at[i, j].set(jnp.sum(x[i:i + kh, j:j + kw] * k))
    return out


def corr2d_ref_vec(x, k):
    """Vectorized pure-JAX reference (same math, independent code path)."""
    kh, kw = k.shape
    ho, wo = x.shape[0] - kh + 1, x.shape[1] - kw + 1
    out = jnp.zeros((ho, wo), jnp.float32)
    for i in range(kh):
        for j in range(kw):
            out = out + x[i:i + ho, j:j + wo].astype(jnp.float32) * k[i, j]
    return out


if __name__ == "__main__":
    key = jax.random.PRNGKey(0)
    k1, k2, k3, kw_key = jax.random.split(key, 4)

    # ConvLayer(kernel_size=(3, 3)): weight = rand(kernel_size), bias = zeros(1)
    kernel_size = (3, 3)
    weight = jax.random.uniform(kw_key, kernel_size, dtype=jnp.float32)
    bias = jnp.zeros((1,), dtype=jnp.float32)

    # Case 1: small 2-D input, single strip (module's forward on raw 2-D X).
    x1 = jax.random.normal(k1, (16, 16), dtype=jnp.float32)
    y1 = jax.block_until_ready(conv_layer_forward(x1, weight, bias))
    y1_ref = corr2d_ref_loop(x1, weight) + bias[0]
    assert y1.shape == (14, 14)
    assert jnp.allclose(y1, y1_ref, atol=1e-5, rtol=1e-5)

    # Case 2: several strips through the (parallel, arbitrary) grid with
    # double-buffered DMA prefetch and one duplicate (skipped) step.
    x2 = jax.random.normal(k2, (26, 144), dtype=jnp.float32)
    y2 = jax.block_until_ready(conv_layer_forward(x2, weight, bias, tm=8))
    y2_ref = corr2d_ref_vec(x2, weight) + bias[0]
    assert y2.shape == (24, 142)
    assert jnp.allclose(y2, y2_ref, atol=1e-5, rtol=1e-5)

    # Case 2b: same input, larger strips -> exercises the fori_loop row-chunk
    # path, the clamped last strip (overshoot > 0) and single-buffer DMA.
    y2b = jax.block_until_ready(conv_layer_forward(x2, weight, bias, tm=16))
    assert jnp.allclose(y2b, y2_ref, atol=1e-5, rtol=1e-5)

    # Case 3: clamped last strip with a partial output row block (ho % tm != 0)
    # plus a duplicate megacore step.
    x3 = jax.random.normal(k3, (21, 140), dtype=jnp.float32)
    y3 = jax.block_until_ready(conv_layer_forward(x3, weight, bias, tm=8))
    y3_ref = corr2d_ref_vec(x3, weight) + bias[0]
    assert y3.shape == (19, 138)
    assert jnp.allclose(y3, y3_ref, atol=1e-5, rtol=1e-5)

    # Case 4: the module's test2 geometry (edge-detector kernel, kh == 1).
    x4 = jnp.ones((6, 8), dtype=jnp.float32).at[:, 2:6].set(0.0)
    k_edge = jnp.array([[1.0, -1.0]], dtype=jnp.float32)
    y4 = jax.block_until_ready(conv_layer_forward(x4, k_edge, bias))
    y4_ref = corr2d_ref_vec(x4, k_edge) + bias[0]
    assert y4.shape == (6, 7)
    assert jnp.allclose(y4, y4_ref, atol=1e-6, rtol=1e-6)

    print("KERNEL_OK")
</pallas_src>

<mosaic_0001>
module attributes {stable_mosaic.version = 11 : i64} {
  func.func @kernel(%arg0: i32, %arg1: i32, %arg2: memref<3x3xf32, #tpu.memory_space<smem>>, %arg3: memref<1xf32, #tpu.memory_space<smem>>, %arg4: memref<16x16xf32, #tpu.memory_space<any>>, %arg5: memref<14x14xf32, #tpu.memory_space<vmem>>, %arg6: memref<1x16x16xf32, #tpu.memory_space<vmem>>, %arg7: memref<1x!tpu.dma_semaphore, #tpu.memory_space<semaphore_mem>>) attributes {dimension_semantics = [#tpu.dimension_semantics<parallel>, #tpu.dimension_semantics<arbitrary>], iteration_bounds = array<i64: 1, 1>, scalar_prefetch = 0 : i64, scratch_operands = 2 : i64, tpu.core_type = #tpu.core_type<tc>, window_params = [{transform_indices = @transform_0, window_bounds = array<i64: 3, 3>}, {transform_indices = @transform_1, window_bounds = array<i64: 1>}, {}, {transform_indices = @transform_3, window_bounds = array<i64: 14, 14>}]} {
    %c1_i32 = arith.constant 1 : i32
    %0 = arith.muli %arg0, %c1_i32 : i32
    %1 = arith.addi %0, %arg1 : i32
    %c0_i32 = arith.constant 0 : i32
    %2 = arith.minsi %1, %c0_i32 : i32
    %c0 = arith.constant 0 : index
    %c0_0 = arith.constant 0 : index
    %3 = memref.load %arg2[%c0, %c0_0] : memref<3x3xf32, #tpu.memory_space<smem>>
    %c0_1 = arith.constant 0 : index
    %c1 = arith.constant 1 : index
    %4 = memref.load %arg2[%c0_1, %c1] : memref<3x3xf32, #tpu.memory_space<smem>>
    %c0_2 = arith.constant 0 : index
    %c2 = arith.constant 2 : index
    %5 = memref.load %arg2[%c0_2, %c2] : memref<3x3xf32, #tpu.memory_space<smem>>
    %c1_3 = arith.constant 1 : index
    %c0_4 = arith.constant 0 : index
    %6 = memref.load %arg2[%c1_3, %c0_4] : memref<3x3xf32, #tpu.memory_space<smem>>
    %c1_5 = arith.constant 1 : index
    %c1_6 = arith.constant 1 : index
    %7 = memref.load %arg2[%c1_5, %c1_6] : memref<3x3xf32, #tpu.memory_space<smem>>
    %c1_7 = arith.constant 1 : index
    %c2_8 = arith.constant 2 : index
    %8 = memref.load %arg2[%c1_7, %c2_8] : memref<3x3xf32, #tpu.memory_space<smem>>
    %c2_9 = arith.constant 2 : index
    %c0_10 = arith.constant 0 : index
    %9 = memref.load %arg2[%c2_9, %c0_10] : memref<3x3xf32, #tpu.memory_space<smem>>
    %c2_11 = arith.constant 2 : index
    %c1_12 = arith.constant 1 : index
    %10 = memref.load %arg2[%c2_11, %c1_12] : memref<3x3xf32, #tpu.memory_space<smem>>
    %c2_13 = arith.constant 2 : index
    %c2_14 = arith.constant 2 : index
    %11 = memref.load %arg2[%c2_13, %c2_14] : memref<3x3xf32, #tpu.memory_space<smem>>
    %c0_15 = arith.constant 0 : index
    %12 = memref.load %arg3[%c0_15] : memref<1xf32, #tpu.memory_space<smem>>
    %c0_i32_16 = arith.constant 0 : i32
    %13 = arith.cmpi eq, %arg1, %c0_i32_16 : i32
    %14 = arith.extui %13 : i1 to i32
    %c0_i32_17 = arith.constant 0 : i32
    %15 = arith.cmpi ne, %14, %c0_i32_17 : i32
    scf.if %15 {
      %c14_i32_120 = arith.constant 14 : i32
      %180 = arith.muli %2, %c14_i32_120 : i32
      %c0_i32_121 = arith.constant 0 : i32
      %181 = arith.minsi %180, %c0_i32_121 : i32
      %c0_i32_122 = arith.constant 0 : i32
      %c0_i32_123 = arith.constant 0 : i32
      %c0_i32_124 = arith.constant 0 : i32
      %182 = tpu.memref_slice %arg4[%181, %c0_i32_124] : memref<16x16xf32, #tpu.memory_space<any>> -> memref<16x16xf32, #tpu.memory_space<any>>
      %c0_i32_125 = arith.constant 0 : i32
      %c0_i32_126 = arith.constant 0 : i32
      %183 = tpu.memref_slice %arg6[%c0_i32_122, %c0_i32_125, %c0_i32_126] : memref<1x16x16xf32, #tpu.memory_space<vmem>> -> memref<1x16x16xf32, #tpu.memory_space<vmem>>
      %184 = tpu.memref_squeeze %183 : memref<1x16x16xf32, #tpu.memory_space<vmem>> -> memref<16x16xf32, #tpu.memory_space<vmem>>
      %185 = tpu.memref_slice %arg7[%c0_i32_123] : memref<1x!tpu.dma_semaphore, #tpu.memory_space<semaphore_mem>> -> memref<1x!tpu.dma_semaphore, #tpu.memory_space<semaphore_mem>>
      %186 = tpu.memref_squeeze %185 : memref<1x!tpu.dma_semaphore, #tpu.memory_space<semaphore_mem>> -> memref<!tpu.dma_semaphore, #tpu.memory_space<semaphore_mem>>
      tpu.enqueue_dma source(%182 : memref<16x16xf32, #tpu.memory_space<any>>) target(%184 : memref<16x16xf32, #tpu.memory_space<vmem>>) target_semaphore(%186 : memref<!tpu.dma_semaphore, #tpu.memory_space<semaphore_mem>>)
    } else {
    }
    %c14_i32 = arith.constant 14 : i32
    %16 = arith.muli %2, %c14_i32 : i32
    %c0_i32_18 = arith.constant 0 : i32
    %17 = arith.minsi %16, %c0_i32_18 : i32
    %c0_i32_19 = arith.constant 0 : i32
    %c0_i32_20 = arith.constant 0 : i32
    %c0_i32_21 = arith.constant 0 : i32
    %18 = tpu.memref_slice %arg4[%17, %c0_i32_21] : memref<16x16xf32, #tpu.memory_space<any>> -> memref<16x16xf32, #tpu.memory_space<any>>
    %c0_i32_22 = arith.constant 0 : i32
    %c0_i32_23 = arith.constant 0 : i32
    %19 = tpu.memref_slice %arg6[%c0_i32_19, %c0_i32_22, %c0_i32_23] : memref<1x16x16xf32, #tpu.memory_space<vmem>> -> memref<1x16x16xf32, #tpu.memory_space<vmem>>
    %20 = tpu.memref_squeeze %19 : memref<1x16x16xf32, #tpu.memory_space<vmem>> -> memref<16x16xf32, #tpu.memory_space<vmem>>
    %21 = tpu.memref_slice %arg7[%c0_i32_20] : memref<1x!tpu.dma_semaphore, #tpu.memory_space<semaphore_mem>> -> memref<1x!tpu.dma_semaphore, #tpu.memory_space<semaphore_mem>>
    %22 = tpu.memref_squeeze %21 : memref<1x!tpu.dma_semaphore, #tpu.memory_space<semaphore_mem>> -> memref<!tpu.dma_semaphore, #tpu.memory_space<semaphore_mem>>
    tpu.wait_dma2 semaphore(%22 : memref<!tpu.dma_semaphore, #tpu.memory_space<semaphore_mem>>) src(%18 : memref<16x16xf32, #tpu.memory_space<any>>) dst(%20 : memref<16x16xf32, #tpu.memory_space<vmem>>)
    %c14_i32_24 = arith.constant 14 : i32
    %23 = arith.muli %2, %c14_i32_24 : i32
    %c0_i32_25 = arith.constant 0 : i32
    %24 = arith.minsi %23, %c0_i32_25 : i32
    %c14_i32_26 = arith.constant 14 : i32
    %25 = arith.muli %2, %c14_i32_26 : i32
    %26 = arith.subi %25, %24 : i32
    %cst = arith.constant 0.000000e+00 : f32
    %27 = vector.broadcast %cst : f32 to vector<8x14xf32>
    %c0_i32_27 = arith.constant 0 : i32
    %28 = arith.addi %26, %c0_i32_27 : i32
    %c0_i32_28 = arith.constant 0 : i32
    %c0_i32_29 = arith.constant 0 : i32
    %c0_i32_30 = arith.constant 0 : i32
    %29 = tpu.memref_slice %arg6[%c0_i32_28, %c0_i32_29, %c0_i32_30] : memref<1x16x16xf32, #tpu.memory_space<vmem>> -> memref<1x16x16xf32, #tpu.memory_space<vmem>>
    %30 = tpu.memref_squeeze %29 : memref<1x16x16xf32, #tpu.memory_space<vmem>> -> memref<16x16xf32, #tpu.memory_space<vmem>>
    %31 = arith.index_cast %28 : i32 to index
    %c0_31 = arith.constant 0 : index
    %32 = vector.load %30[%31, %c0_31] : memref<16x16xf32, #tpu.memory_space<vmem>>, vector<8x14xf32>
    %33 = vector.broadcast %3 : f32 to vector<8x14xf32>
    %34 = arith.mulf %32, %33 : vector<8x14xf32>
    %35 = arith.addf %27, %34 : vector<8x14xf32>
    %c0_i32_32 = arith.constant 0 : i32
    %36 = arith.addi %26, %c0_i32_32 : i32
    %c0_i32_33 = arith.constant 0 : i32
    %c0_i32_34 = arith.constant 0 : i32
    %c0_i32_35 = arith.constant 0 : i32
    %37 = tpu.memref_slice %arg6[%c0_i32_33, %c0_i32_34, %c0_i32_35] : memref<1x16x16xf32, #tpu.memory_space<vmem>> -> memref<1x16x16xf32, #tpu.memory_space<vmem>>
    %38 = tpu.memref_squeeze %37 : memref<1x16x16xf32, #tpu.memory_space<vmem>> -> memref<16x16xf32, #tpu.memory_space<vmem>>
    %39 = arith.index_cast %36 : i32 to index
    %c1_36 = arith.constant 1 : index
    %40 = vector.load %38[%39, %c1_36] : memref<16x16xf32, #tpu.memory_space<vmem>>, vector<8x14xf32>
    %41 = vector.broadcast %4 : f32 to vector<8x14xf32>
    %42 = arith.mulf %40, %41 : vector<8x14xf32>
    %43 = arith.addf %35, %42 : vector<8x14xf32>
    %c0_i32_37 = arith.constant 0 : i32
    %44 = arith.addi %26, %c0_i32_37 : i32
    %c0_i32_38 = arith.constant 0 : i32
    %c0_i32_39 = arith.constant 0 : i32
    %c0_i32_40 = arith.constant 0 : i32
    %45 = tpu.memref_slice %arg6[%c0_i32_38, %c0_i32_39, %c0_i32_40] : memref<1x16x16xf32, #tpu.memory_space<vmem>> -> memref<1x16x16xf32, #tpu.memory_space<vmem>>
    %46 = tpu.memref_squeeze %45 : memref<1x16x16xf32, #tpu.memory_space<vmem>> -> memref<16x16xf32, #tpu.memory_space<vmem>>
    %47 = arith.index_cast %44 : i32 to index
    %c2_41 = arith.constant 2 : index
    %48 = vector.load %46[%47, %c2_41] : memref<16x16xf32, #tpu.memory_space<vmem>>, vector<8x14xf32>
    %49 = vector.broadcast %5 : f32 to vector<8x14xf32>
    %50 = arith.mulf %48, %49 : vector<8x14xf32>
    %51 = arith.addf %43, %50 : vector<8x14xf32>
    %c1_i32_42 = arith.constant 1 : i32
    %52 = arith.addi %26, %c1_i32_42 : i32
    %c0_i32_43 = arith.constant 0 : i32
    %c0_i32_44 = arith.constant 0 : i32
    %c0_i32_45 = arith.constant 0 : i32
    %53 = tpu.memref_slice %arg6[%c0_i32_43, %c0_i32_44, %c0_i32_45] : memref<1x16x16xf32, #tpu.memory_space<vmem>> -> memref<1x16x16xf32, #tpu.memory_space<vmem>>
    %54 = tpu.memref_squeeze %53 : memref<1x16x16xf32, #tpu.memory_space<vmem>> -> memref<16x16xf32, #tpu.memory_space<vmem>>
    %55 = arith.index_cast %52 : i32 to index
    %c0_46 = arith.constant 0 : index
    %56 = vector.load %54[%55, %c0_46] : memref<16x16xf32, #tpu.memory_space<vmem>>, vector<8x14xf32>
    %57 = vector.broadcast %6 : f32 to vector<8x14xf32>
    %58 = arith.mulf %56, %57 : vector<8x14xf32>
    %59 = arith.addf %51, %58 : vector<8x14xf32>
    %c1_i32_47 = arith.constant 1 : i32
    %60 = arith.addi %26, %c1_i32_47 : i32
    %c0_i32_48 = arith.constant 0 : i32
    %c0_i32_49 = arith.constant 0 : i32
    %c0_i32_50 = arith.constant 0 : i32
    %61 = tpu.memref_slice %arg6[%c0_i32_48, %c0_i32_49, %c0_i32_50] : memref<1x16x16xf32, #tpu.memory_space<vmem>> -> memref<1x16x16xf32, #tpu.memory_space<vmem>>
    %62 = tpu.memref_squeeze %61 : memref<1x16x16xf32, #tpu.memory_space<vmem>> -> memref<16x16xf32, #tpu.memory_space<vmem>>
    %63 = arith.index_cast %60 : i32 to index
    %c1_51 = arith.constant 1 : index
    %64 = vector.load %62[%63, %c1_51] : memref<16x16xf32, #tpu.memory_space<vmem>>, vector<8x14xf32>
    %65 = vector.broadcast %7 : f32 to vector<8x14xf32>
    %66 = arith.mulf %64, %65 : vector<8x14xf32>
    %67 = arith.addf %59, %66 : vector<8x14xf32>
    %c1_i32_52 = arith.constant 1 : i32
    %68 = arith.addi %26, %c1_i32_52 : i32
    %c0_i32_53 = arith.constant 0 : i32
    %c0_i32_54 = arith.constant 0 : i32
    %c0_i32_55 = arith.constant 0 : i32
    %69 = tpu.memref_slice %arg6[%c0_i32_53, %c0_i32_54, %c0_i32_55] : memref<1x16x16xf32, #tpu.memory_space<vmem>> -> memref<1x16x16xf32, #tpu.memory_space<vmem>>
    %70 = tpu.memref_squeeze %69 : memref<1x16x16xf32, #tpu.memory_space<vmem>> -> memref<16x16xf32, #tpu.memory_space<vmem>>
    %71 = arith.index_cast %68 : i32 to index
    %c2_56 = arith.constant 2 : index
    %72 = vector.load %70[%71, %c2_56] : memref<16x16xf32, #tpu.memory_space<vmem>>, vector<8x14xf32>
    %73 = vector.broadcast %8 : f32 to vector<8x14xf32>
    %74 = arith.mulf %72, %73 : vector<8x14xf32>
    %75 = arith.addf %67, %74 : vector<8x14xf32>
    %c2_i32 = arith.constant 2 : i32
    %76 = arith.addi %26, %c2_i32 : i32
    %c0_i32_57 = arith.constant 0 : i32
    %c0_i32_58 = arith.constant 0 : i32
    %c0_i32_59 = arith.constant 0 : i32
    %77 = tpu.memref_slice %arg6[%c0_i32_57, %c0_i32_58, %c0_i32_59] : memref<1x16x16xf32, #tpu.memory_space<vmem>> -> memref<1x16x16xf32, #tpu.memory_space<vmem>>
    %78 = tpu.memref_squeeze %77 : memref<1x16x16xf32, #tpu.memory_space<vmem>> -> memref<16x16xf32, #tpu.memory_space<vmem>>
    %79 = arith.index_cast %76 : i32 to index
    %c0_60 = arith.constant 0 : index
    %80 = vector.load %78[%79, %c0_60] : memref<16x16xf32, #tpu.memory_space<vmem>>, vector<8x14xf32>
    %81 = vector.broadcast %9 : f32 to vector<8x14xf32>
    %82 = arith.mulf %80, %81 : vector<8x14xf32>
    %83 = arith.addf %75, %82 : vector<8x14xf32>
    %c2_i32_61 = arith.constant 2 : i32
    %84 = arith.addi %26, %c2_i32_61 : i32
    %c0_i32_62 = arith.constant 0 : i32
    %c0_i32_63 = arith.constant 0 : i32
    %c0_i32_64 = arith.constant 0 : i32
    %85 = tpu.memref_slice %arg6[%c0_i32_62, %c0_i32_63, %c0_i32_64] : memref<1x16x16xf32, #tpu.memory_space<vmem>> -> memref<1x16x16xf32, #tpu.memory_space<vmem>>
    %86 = tpu.memref_squeeze %85 : memref<1x16x16xf32, #tpu.memory_space<vmem>> -> memref<16x16xf32, #tpu.memory_space<vmem>>
    %87 = arith.index_cast %84 : i32 to index
    %c1_65 = arith.constant 1 : index
    %88 = vector.load %86[%87, %c1_65] : memref<16x16xf32, #tpu.memory_space<vmem>>, vector<8x14xf32>
    %89 = vector.broadcast %10 : f32 to vector<8x14xf32>
    %90 = arith.mulf %88, %89 : vector<8x14xf32>
    %91 = arith.addf %83, %90 : vector<8x14xf32>
    %c2_i32_66 = arith.constant 2 : i32
    %92 = arith.addi %26, %c2_i32_66 : i32
    %c0_i32_67 = arith.constant 0 : i32
    %c0_i32_68 = arith.constant 0 : i32
    %c0_i32_69 = arith.constant 0 : i32
    %93 = tpu.memref_slice %arg6[%c0_i32_67, %c0_i32_68, %c0_i32_69] : memref<1x16x16xf32, #tpu.memory_space<vmem>> -> memref<1x16x16xf32, #tpu.memory_space<vmem>>
    %94 = tpu.memref_squeeze %93 : memref<1x16x16xf32, #tpu.memory_space<vmem>> -> memref<16x16xf32, #tpu.memory_space<vmem>>
    %95 = arith.index_cast %92 : i32 to index
    %c2_70 = arith.constant 2 : index
    %96 = vector.load %94[%95, %c2_70] : memref<16x16xf32, #tpu.memory_space<vmem>>, vector<8x14xf32>
    %97 = vector.broadcast %11 : f32 to vector<8x14xf32>
    %98 = arith.mulf %96, %97 : vector<8x14xf32>
    %99 = arith.addf %91, %98 : vector<8x14xf32>
    %100 = vector.broadcast %12 : f32 to vector<8x14xf32>
    %101 = arith.addf %99, %100 : vector<8x14xf32>
    %c0_71 = arith.constant 0 : index
    %c0_72 = arith.constant 0 : index
    %102 = vector.load %arg5[%c0_71, %c0_72] : memref<14x14xf32, #tpu.memory_space<vmem>>, vector<8x14xf32>
    tpu.vector_store %arg5[%c0_71, %c0_72], %101 {strides = array<i32>} : memref<14x14xf32, #tpu.memory_space<vmem>>, vector<8x14xf32>,
    %c8_i32 = arith.constant 8 : i32
    %103 = arith.addi %26, %c8_i32 : i32
    %cst_73 = arith.constant 0.000000e+00 : f32
    %104 = vector.broadcast %cst_73 : f32 to vector<6x14xf32>
    %c0_i32_74 = arith.constant 0 : i32
    %105 = arith.addi %103, %c0_i32_74 : i32
    %c0_i32_75 = arith.constant 0 : i32
    %c0_i32_76 = arith.constant 0 : i32
    %c0_i32_77 = arith.constant 0 : i32
    %106 = tpu.memref_slice %arg6[%c0_i32_75, %c0_i32_76, %c0_i32_77] : memref<1x16x16xf32, #tpu.memory_space<vmem>> -> memref<1x16x16xf32, #tpu.memory_space<vmem>>
    %107 = tpu.memref_squeeze %106 : memref<1x16x16xf32, #tpu.memory_space<vmem>> -> memref<16x16xf32, #tpu.memory_space<vmem>>
    %108 = arith.index_cast %105 : i32 to index
    %c0_78 = arith.constant 0 : index
    %109 = vector.load %107[%108, %c0_78] : memref<16x16xf32, #tpu.memory_space<vmem>>, vector<6x14xf32>
    %110 = vector.broadcast %3 : f32 to vector<6x14xf32>
    %111 = arith.mulf %109, %110 : vector<6x14xf32>
    %112 = arith.addf %104, %111 : vector<6x14xf32>
    %c0_i32_79 = arith.constant 0 : i32
    %113 = arith.addi %103, %c0_i32_79 : i32
    %c0_i32_80 = arith.constant 0 : i32
    %c0_i32_81 = arith.constant 0 : i32
    %c0_i32_82 = arith.constant 0 : i32
    %114 = tpu.memref_slice %arg6[%c0_i32_80, %c0_i32_81, %c0_i32_82] : memref<1x16x16xf32, #tpu.memory_space<vmem>> -> memref<1x16x16xf32, #tpu.memory_space<vmem>>
    %115 = tpu.memref_squeeze %114 : memref<1x16x16xf32, #tpu.memory_space<vmem>> -> memref<16x16xf32, #tpu.memory_space<vmem>>
    %116 = arith.index_cast %113 : i32 to index
    %c1_83 = arith.constant 1 : index
    %117 = vector.load %115[%116, %c1_83] : memref<16x16xf32, #tpu.memory_space<vmem>>, vector<6x14xf32>
    %118 = vector.broadcast %4 : f32 to vector<6x14xf32>
    %119 = arith.mulf %117, %118 : vector<6x14xf32>
    %120 = arith.addf %112, %119 : vector<6x14xf32>
    %c0_i32_84 = arith.constant 0 : i32
    %121 = arith.addi %103, %c0_i32_84 : i32
    %c0_i32_85 = arith.constant 0 : i32
    %c0_i32_86 = arith.constant 0 : i32
    %c0_i32_87 = arith.constant 0 : i32
    %122 = tpu.memref_slice %arg6[%c0_i32_85, %c0_i32_86, %c0_i32_87] : memref<1x16x16xf32, #tpu.memory_space<vmem>> -> memref<1x16x16xf32, #tpu.memory_space<vmem>>
    %123 = tpu.memref_squeeze %122 : memref<1x16x16xf32, #tpu.memory_space<vmem>> -> memref<16x16xf32, #tpu.memory_space<vmem>>
    %124 = arith.index_cast %121 : i32 to index
    %c2_88 = arith.constant 2 : index
    %125 = vector.load %123[%124, %c2_88] : memref<16x16xf32, #tpu.memory_space<vmem>>, vector<6x14xf32>
    %126 = vector.broadcast %5 : f32 to vector<6x14xf32>
    %127 = arith.mulf %125, %126 : vector<6x14xf32>
    %128 = arith.addf %120, %127 : vector<6x14xf32>
    %c1_i32_89 = arith.constant 1 : i32
    %129 = arith.addi %103, %c1_i32_89 : i32
    %c0_i32_90 = arith.constant 0 : i32
    %c0_i32_91 = arith.constant 0 : i32
    %c0_i32_92 = arith.constant 0 : i32
    %130 = tpu.memref_slice %arg6[%c0_i32_90, %c0_i32_91, %c0_i32_92] : memref<1x16x16xf32, #tpu.memory_space<vmem>> -> memref<1x16x16xf32, #tpu.memory_space<vmem>>
    %131 = tpu.memref_squeeze %130 : memref<1x16x16xf32, #tpu.memory_space<vmem>> -> memref<16x16xf32, #tpu.memory_space<vmem>>
    %132 = arith.index_cast %129 : i32 to index
    %c0_93 = arith.constant 0 : index
    %133 = vector.load %131[%132, %c0_93] : memref<16x16xf32, #tpu.memory_space<vmem>>, vector<6x14xf32>
    %134 = vector.broadcast %6 : f32 to vector<6x14xf32>
    %135 = arith.mulf %133, %134 : vector<6x14xf32>
    %136 = arith.addf %128, %135 : vector<6x14xf32>
    %c1_i32_94 = arith.constant 1 : i32
    %137 = arith.addi %103, %c1_i32_94 : i32
    %c0_i32_95 = arith.constant 0 : i32
    %c0_i32_96 = arith.constant 0 : i32
    %c0_i32_97 = arith.constant 0 : i32
    %138 = tpu.memref_slice %arg6[%c0_i32_95, %c0_i32_96, %c0_i32_97] : memref<1x16x16xf32, #tpu.memory_space<vmem>> -> memref<1x16x16xf32, #tpu.memory_space<vmem>>
    %139 = tpu.memref_squeeze %138 : memref<1x16x16xf32, #tpu.memory_space<vmem>> -> memref<16x16xf32, #tpu.memory_space<vmem>>
    %140 = arith.index_cast %137 : i32 to index
    %c1_98 = arith.constant 1 : index
    %141 = vector.load %139[%140, %c1_98] : memref<16x16xf32, #tpu.memory_space<vmem>>, vector<6x14xf32>
    %142 = vector.broadcast %7 : f32 to vector<6x14xf32>
    %143 = arith.mulf %141, %142 : vector<6x14xf32>
    %144 = arith.addf %136, %143 : vector<6x14xf32>
    %c1_i32_99 = arith.constant 1 : i32
    %145 = arith.addi %103, %c1_i32_99 : i32
    %c0_i32_100 = arith.constant 0 : i32
    %c0_i32_101 = arith.constant 0 : i32
    %c0_i32_102 = arith.constant 0 : i32
    %146 = tpu.memref_slice %arg6[%c0_i32_100, %c0_i32_101, %c0_i32_102] : memref<1x16x16xf32, #tpu.memory_space<vmem>> -> memref<1x16x16xf32, #tpu.memory_space<vmem>>
    %147 = tpu.memref_squeeze %146 : memref<1x16x16xf32, #tpu.memory_space<vmem>> -> memref<16x16xf32, #tpu.memory_space<vmem>>
    %148 = arith.index_cast %145 : i32 to index
    %c2_103 = arith.constant 2 : index
    %149 = vector.load %147[%148, %c2_103] : memref<16x16xf32, #tpu.memory_space<vmem>>, vector<6x14xf32>
    %150 = vector.broadcast %8 : f32 to vector<6x14xf32>
    %151 = arith.mulf %149, %150 : vector<6x14xf32>
    %152 = arith.addf %144, %151 : vector<6x14xf32>
    %c2_i32_104 = arith.constant 2 : i32
    %153 = arith.addi %103, %c2_i32_104 : i32
    %c0_i32_105 = arith.constant 0 : i32
    %c0_i32_106 = arith.constant 0 : i32
    %c0_i32_107 = arith.constant 0 : i32
    %154 = tpu.memref_slice %arg6[%c0_i32_105, %c0_i32_106, %c0_i32_107] : memref<1x16x16xf32, #tpu.memory_space<vmem>> -> memref<1x16x16xf32, #tpu.memory_space<vmem>>
    %155 = tpu.memref_squeeze %154 : memref<1x16x16xf32, #tpu.memory_space<vmem>> -> memref<16x16xf32, #tpu.memory_space<vmem>>
    %156 = arith.index_cast %153 : i32 to index
    %c0_108 = arith.constant 0 : index
    %157 = vector.load %155[%156, %c0_108] : memref<16x16xf32, #tpu.memory_space<vmem>>, vector<6x14xf32>
    %158 = vector.broadcast %9 : f32 to vector<6x14xf32>
    %159 = arith.mulf %157, %158 : vector<6x14xf32>
    %160 = arith.addf %152, %159 : vector<6x14xf32>
    %c2_i32_109 = arith.constant 2 : i32
    %161 = arith.addi %103, %c2_i32_109 : i32
    %c0_i32_110 = arith.constant 0 : i32
    %c0_i32_111 = arith.constant 0 : i32
    %c0_i32_112 = arith.constant 0 : i32
    %162 = tpu.memref_slice %arg6[%c0_i32_110, %c0_i32_111, %c0_i32_112] : memref<1x16x16xf32, #tpu.memory_space<vmem>> -> memref<1x16x16xf32, #tpu.memory_space<vmem>>
    %163 = tpu.memref_squeeze %162 : memref<1x16x16xf32, #tpu.memory_space<vmem>> -> memref<16x16xf32, #tpu.memory_space<vmem>>
    %164 = arith.index_cast %161 : i32 to index
    %c1_113 = arith.constant 1 : index
    %165 = vector.load %163[%164, %c1_113] : memref<16x16xf32, #tpu.memory_space<vmem>>, vector<6x14xf32>
    %166 = vector.broadcast %10 : f32 to vector<6x14xf32>
    %167 = arith.mulf %165, %166 : vector<6x14xf32>
    %168 = arith.addf %160, %167 : vector<6x14xf32>
    %c2_i32_114 = arith.constant 2 : i32
    %169 = arith.addi %103, %c2_i32_114 : i32
    %c0_i32_115 = arith.constant 0 : i32
    %c0_i32_116 = arith.constant 0 : i32
    %c0_i32_117 = arith.constant 0 : i32
    %170 = tpu.memref_slice %arg6[%c0_i32_115, %c0_i32_116, %c0_i32_117] : memref<1x16x16xf32, #tpu.memory_space<vmem>> -> memref<1x16x16xf32, #tpu.memory_space<vmem>>
    %171 = tpu.memref_squeeze %170 : memref<1x16x16xf32, #tpu.memory_space<vmem>> -> memref<16x16xf32, #tpu.memory_space<vmem>>
    %172 = arith.index_cast %169 : i32 to index
    %c2_118 = arith.constant 2 : index
    %173 = vector.load %171[%172, %c2_118] : memref<16x16xf32, #tpu.memory_space<vmem>>, vector<6x14xf32>
    %174 = vector.broadcast %11 : f32 to vector<6x14xf32>
    %175 = arith.mulf %173, %174 : vector<6x14xf32>
    %176 = arith.addf %168, %175 : vector<6x14xf32>
    %177 = vector.broadcast %12 : f32 to vector<6x14xf32>
    %178 = arith.addf %176, %177 : vector<6x14xf32>
    %c8 = arith.constant 8 : index
    %c0_119 = arith.constant 0 : index
    %179 = vector.load %arg5[%c8, %c0_119] : memref<14x14xf32, #tpu.memory_space<vmem>>, vector<6x14xf32>
    tpu.vector_store %arg5[%c8, %c0_119], %178 {strides = array<i32>} : memref<14x14xf32, #tpu.memory_space<vmem>>, vector<6x14xf32>,
    return
  }
  func.func @transform_0(%arg0: i32, %arg1: i32) -> (i32, i32) {
    %c0_i32 = arith.constant 0 : i32
    %c0_i32_0 = arith.constant 0 : i32
    %c0_i32_1 = arith.constant 0 : i32
    return %c0_i32, %c0_i32_0 : i32, i32
  }
  func.func @transform_1(%arg0: i32, %arg1: i32) -> i32 {
    %c0_i32 = arith.constant 0 : i32
    %c0_i32_0 = arith.constant 0 : i32
    return %c0_i32 : i32
  }
  func.func @transform_3(%arg0: i32, %arg1: i32) -> (i32, i32) {
    %c1_i32 = arith.constant 1 : i32
    %0 = arith.muli %arg0, %c1_i32 : i32
    %1 = arith.addi %0, %arg1 : i32
    %c0_i32 = arith.constant 0 : i32
    %c0_i32_0 = arith.constant 0 : i32
    return %1, %c0_i32 : i32, i32
  }
}

</mosaic_0001>

<bundles_post_ra>
// kernel: tpu_custom_call.1
= control target key start
LH: loop header
LB: loop body
LE: loop exit
PB: predicated region body
PF: predicated region fallthrough
CT: control target
= control target key end

     0   :  { %9 = vsyncpa [#allocation7], 0  ;;  %s393_s0 = inlined_call_operand.hbm [shape: f32[3,3], index: 0, kind: input, shape index: {}]   ;;  %s394_s1 = inlined_call_operand.<no memory space> [shape: f32[1], index: 1, kind: input, shape index: {}]   ;;  %s395_s2 = inlined_call_operand.hbm [shape: f32[16,16], index: 2, kind: input, shape index: {}]   ;;  %s396_s3 = inlined_call_operand.hbm [shape: f32[14,14], index: 3, kind: output, shape index: {}]  }
   0x1   :  { %10 = vsyncpa [#allocation6], 0  ;;  %s240_s14 = scalar_lea.hbm %s393_s0, 64 }
   0x2   :  { %p241_p0 = scmp.ne.s32.totalorder %s393_s0, %s240_s14  ;;  %p244_p1 = scmp.lt.u32.totalorder %s240_s14, %s393_s0 }
   0x4   :  { %p246_p2 = pnand %p244_p1, %p241_p0 }
   0x6   :  { %249 = shalt.err (!%p246_p2)
}
   0x7   :  { %s300_s19 = smov [#allocation5]  }
   0x8   :  { %18 = dma.hbm_to_smem %s393_s0, 64, %s300_s19, [#allocation7]  }
   0x9   :  { %294 = dma.done.wait [#allocation7], 64  }
   0xa   :  { %295 = vsyncadd [#allocation7], 4294967232 }
   0xb   :  { %24 = sfence }
   0xc   :  { %s339_s22 = sld [smem:[#allocation5]]  ;;  %s341_s23 = sld [smem:[#allocation5 + $0x1]] }
   0xd   :  { %s343_s24 = sld [smem:[#allocation5 + $0x2]]  ;;  %s345_s25 = sld [smem:[#allocation5 + $0x80]] }
   0xe   :  { %s347_s26 = sld [smem:[#allocation5 + $0x81]]  ;;  %s349_s27 = sld [smem:[#allocation5 + $0x82]] }
   0xf   :  { %s351_s28 = sld [smem:[#allocation5 + $0x100]]  ;;  %s353_s29 = sld [smem:[#allocation5 + $0x101]] }
  0x10   :  { %s355_s0 = sld [smem:[#allocation5 + $0x102]]  ;;  %s301_s30 = smov [#allocation2]  }
  0x11   :  { %s56_s4 = sshll.u32 %s301_s30, 4  ;;  %s250_s7 = scalar_lea.hbm %s395_s2, 256  ;;  %s57_s4 = int_to_ptr.vmem [resolvable:$true] %s56_s4 }
  0x12   :  { %p251_p3 = scmp.ne.s32.totalorder %s395_s2, %s250_s7  ;;  %p254_p4 = scmp.lt.u32.totalorder %s250_s7, %s395_s2 }
  0x14   :  { %p256_p5 = pnand %p254_p4, %p251_p3 }
  0x16   :  { %259 = shalt.err (!%p256_p5)  }
  0x17   :  { %s260_s12 = scalar_lea.vmem %s57_s4, 256  ;;  %p265_p7 = scmp.lt.s32.totalorder %s57_s4, %s57_s4 }
  0x18   :  { %p261_p6 = scmp.ne.s32.totalorder %s57_s4, %s260_s12  ;;  %p266_p8 = scmp.lt.s32.totalorder %s260_s12, %s260_s12 }
  0x1a   :  { %p267_p9 = por %p266_p8, %p265_p7 }
  0x1c   :  { %p268_p10 = pnand %p267_p9, %p261_p6 }
  0x1e   :  { %271 = shalt.err (!%p268_p10)  }
  0x1f   :  { %59 = dma.hbm_to_vmem [thread:$0]  %s395_s2, 256, %s57_s4, [#allocation3] }
  0x20   :  { %296 = dma.done.wait [#allocation3], 256 }
  0x21   :  { %297 = vsyncadd [#allocation3], 4294967040  ;;  %v79_v0 = vstv %s343_s24  ;;  %v72_v1 = vstv %s341_s23  ;;  %v68_v2 = vld [vmem:[#allocation2] sm:$0xff]  ;;  %v132_v3 = vld [vmem:[#allocation2 + $0x8] sm:$0x3f]  ;;  %s302_s15 = smov 126   ;;  %v92_v8 = vstv %s347_s26  ;;  %v99_v13 = vstv %s349_s27 }
  0x22   :  { %v80_v4 = vmul.f32 %v79_v0, %v68_v2  ;;  %v73_v5 = vmul.f32 %v72_v1, %v68_v2  ;;  %v141_v6 = vmul.f32 %v132_v3, %v79_v0  ;;  %v135_v7 = vmul.f32 %v132_v3, %v72_v1  ;;  %s303_s16 = smov 127   ;;  %v149_v9 = vld [vmem:[#allocation2 + $0x9] sm:$0x3f]  ;;  %v88_v10 = vld [vmem:[#allocation2 + $0x1] sm:$0xff]  ;;  %s304_s2 = smov [#allocation8]  }
  0x23   :  { %v152_v11 = vmul.f32 %v149_v9, %v92_v8  ;;  %v93_v12 = vmul.f32 %v92_v8, %v88_v10  ;;  %v158_v14 = vmul.f32 %v149_v9, %v99_v13  ;;  %v100_v15 = vmul.f32 %v99_v13, %v88_v10  ;;  %v166_v17 = vld [vmem:[#allocation2 + $0xa] sm:$0x3f]  ;;  %v108_v18 = vld [vmem:[#allocation2 + $0x2] sm:$0xff]  ;;  %s193_s17 = sshll.u32 %s304_s2, 4  ;;  %s194_s17 = int_to_ptr.vmem [resolvable:$true] %s193_s17 }
  0x24   :  { %82 = vrot.lane.b32.xlu1 %v80_v4, %s302_s15  ;;  %75 = vrot.lane.b32.xlu0 %v73_v5, %s303_s16  ;;  %v112_v16 = vstv %s353_s29  ;;  %v119_v21 = vstv %s355_s0  ;;  %vm182_vm0 = vcmask 111616   ;;  %vm128_vm1 = vcmask 113664   ;;  %s272_s20 = scalar_lea.vmem %s194_s17, 256  ;;  %p277_p12 = scmp.lt.s32.totalorder %s194_s17, %s194_s17 }
  0x25   :  { %v169_v19 = vmul.f32 %v166_v17, %v112_v16  ;;  %v113_v20 = vmul.f32 %v112_v16, %v108_v18  ;;  %v175_v22 = vmul.f32 %v166_v17, %v119_v21  ;;  %v120_v23 = vmul.f32 %v119_v21, %v108_v18  ;;  %p273_p11 = scmp.ne.s32.totalorder %s194_s17, %s272_s20  ;;  %p278_p13 = scmp.lt.s32.totalorder %s272_s20, %s272_s20 }
  0x26   :  { %v69_v24 = vstv %s339_s22  ;;  %v89_v26 = vstv %s345_s25  ;;  %v109_v41 = vstv %s351_s28  ;;  %v126_v57 = vstv %s394_s1 }
  0x27   :  { %v70_v25 = vmul.f32 %v69_v24, %v68_v2  ;;  %v133_v30 = vmul.f32 %v132_v3, %v69_v24  ;;  %v90_v31 = vmul.f32 %v89_v26, %v88_v10  ;;  %v150_v36 = vmul.f32 %v149_v9, %v89_v26  ;;  %p279_p0 = por %p278_p13, %p277_p12 }
  0x28   :  { %143 = vrot.lane.b32.xlu1 %v141_v6, %s302_s15  ;;  %137 = vrot.lane.b32.xlu0 %v135_v7, %s303_s16  ;;  %v167_v45 = vmul.f32 %v166_v17, %v109_v41  ;;  %v110_v46 = vmul.f32 %v109_v41, %v108_v18 }
  0x29   :  { %p280_p1 = pnand %p279_p0, %p273_p11 }
  0x2c   :  { %154 = vrot.lane.b32.xlu1 %v152_v11, %s303_s16  ;;  %95 = vrot.lane.b32.xlu0 %v93_v12, %s303_s16 }
  0x30   :  { %160 = vrot.lane.b32.xlu1 %v158_v14, %s302_s15  ;;  %102 = vrot.lane.b32.xlu0 %v100_v15, %s302_s15 }
  0x34   :  { %171 = vrot.lane.b32.xlu1 %v169_v19, %s303_s16  ;;  %115 = vrot.lane.b32.xlu0 %v113_v20, %s303_s16 }
  0x38   :  { %177 = vrot.lane.b32.xlu1 %v175_v22, %s302_s15  ;;  %122 = vrot.lane.b32.xlu0 %v120_v23, %s302_s15 }
  0x96   :  { %v83_v27 = vpop.permute.xlu1 %82  ;;  %v76_v28 = vpop.permute.xlu0 %75 }
  0x97   :  { %v78_v29 = vadd.f32 %v76_v28, %v70_v25 }
  0x99   :  { %v85_v32 = vadd.f32 %v83_v27, %v78_v29 }
  0x9a   :  { %v144_v33 = vpop.permute.xlu1 %143  ;;  %v138_v34 = vpop.permute.xlu0 %137 }
  0x9b   :  { %v140_v35 = vadd.f32 %v138_v34, %v133_v30  ;;  %v91_v37 = vadd.f32 %v90_v31, %v85_v32 }
  0x9d   :  { %v146_v38 = vadd.f32 %v144_v33, %v140_v35 }
  0x9e   :  { %v155_v39 = vpop.permute.xlu1 %154  ;;  %v96_v40 = vpop.permute.xlu0 %95 }
  0x9f   :  { %v151_v42 = vadd.f32 %v150_v36, %v146_v38  ;;  %v98_v44 = vadd.f32 %v96_v40, %v91_v37 }
  0xa1   :  { %v157_v43 = vadd.f32 %v155_v39, %v151_v42 }
  0xa2   :  { %v161_v47 = vpop.permute.xlu1 %160  ;;  %v103_v48 = vpop.permute.xlu0 %102 }
  0xa3   :  { %v163_v49 = vadd.f32 %v161_v47, %v157_v43  ;;  %v105_v50 = vadd.f32 %v103_v48, %v98_v44 }
  0xa5   :  { %v168_v51 = vadd.f32 %v167_v45, %v163_v49  ;;  %v111_v52 = vadd.f32 %v110_v46, %v105_v50 }
  0xa6   :  { %v172_v53 = vpop.permute.xlu1 %171  ;;  %v116_v54 = vpop.permute.xlu0 %115 }
  0xa7   :  { %v174_v55 = vadd.f32 %v172_v53, %v168_v51  ;;  %v118_v56 = vadd.f32 %v116_v54, %v111_v52 }
  0xaa   :  { %v178_v58 = vpop.permute.xlu1 %177  ;;  %v123_v59 = vpop.permute.xlu0 %122 }
  0xab   :  { %v180_v60 = vadd.f32 %v178_v58, %v174_v55  ;;  %v125_v61 = vadd.f32 %v123_v59, %v118_v56 }
  0xad   :  { %v181_v62 = vadd.f32 %v180_v60, %v126_v57  ;;  %v127_v63 = vadd.f32 %v126_v57, %v125_v61 }
  0xaf   :  { %183 = vst.msk [vmem:[#allocation8 + $0x8] sm:$0x3f] %vm182_vm0, %v181_v62 }
  0xb0   :  { %129 = vst.msk [vmem:[#allocation8] sm:$0xff] %vm128_vm1, %v127_v63 }
  0xb1   :  { %283 = shalt.err (!%p280_p1)
}
  0xb2   :  { %s284_s22 = scalar_lea.hbm %s396_s3, 256 }
  0xb3   :  { %p285_p2 = scmp.ne.s32.totalorder %s396_s3, %s284_s22  ;;  %p288_p3 = scmp.lt.u32.totalorder %s284_s22, %s396_s3 }
  0xb5   :  { %p290_p4 = pnand %p288_p3, %p285_p2 }
  0xb7   :  { %293 = shalt.err (!%p290_p4)
}
  0xb8   :  { %s305_s27 = smov 128   ;;  %s306_s28 = smov 8  }
  0xb9   :  { %199 = dma.vmem_to_hbm [thread:$0]  %s194_s17, 256, %s396_s3, [#allocation6], %s305_s27, %s305_s27, %s306_s28  }
  0xba   :  { %298 = dma.done.wait [#allocation6], 256  }
  0xbb   :  { %299 = vsyncadd [#allocation6], 4294967040 }
  0xbc   :  { %203 = vsyncpa [#allocation6], 1 }
  0xbd   :  { %204 = vsyncpa [#allocation7], 1 }
  0xbe   :  { %205 = vsyncmov [#allocation3] }
  0xc1   :  { %s206_s30 = vpop.sfrf %205 }
  0xc2   :  { %p232_p5 = scmp.ne.s32.totalorder %s206_s30, 0 }
  0xc4   :  { %210 = shalt.err (%p232_p5)  }

</bundles_post_ra>
